<compile_context>
chip_gen: v5e
topology: v5e:2x2
jax: 0.10.0
libtpu: 0.0.40
codegen_flags: <defaults>
</compile_context>

<pallas_src>
import jax
import jax.numpy as jnp
from jax.experimental import pallas as pl
from jax.experimental.pallas import tpu as pltpu


def _round_up(x, m):
    return ((x + m - 1) // m) * m


def gru_kernel(hx_ref, wbig_ref, wqh_ref, out_ref):
    """One lane-dense tile: channels on sublanes, B*L positions on lanes.

    hx_ref  : (H+I, N) bf16  -- [h; x] stacked along channels
    wbig_ref: (3H, H+I) bf16 -- rows 0:H = Wz, H:2H = Wr, 2H:3H = [0 | Wq_x]
    wqh_ref : (H, H)    bf16 -- h-part of convq's weight
    out_ref : (H, N)    f32
    """
    H = wqh_ref.shape[0]

    hx = hx_ref[...]                              # (H+I, N) bf16
    h = hx[:H, :].astype(jnp.float32)             # f32 copy of h for gating/blend

    # One fused MXU pass: z_pre | r_pre | (Wq_x @ x)
    big = jnp.dot(wbig_ref[...], hx, preferred_element_type=jnp.float32)  # (3H, N)
    z = jax.nn.sigmoid(big[:H, :])
    r = jax.nn.sigmoid(big[H:2 * H, :])
    qx = big[2 * H:, :]

    rh = (r * h).astype(jnp.bfloat16)
    q = jnp.tanh(jnp.dot(wqh_ref[...], rh, preferred_element_type=jnp.float32) + qx)

    # h' = (1 - z) * h + z * q  ==  h + z * (q - h)
    out_ref[...] = (h + z * (q - h)).astype(out_ref.dtype)


def gru_forward(h, x, wz, wr, wq, *, max_tile_n=512):
    """h: (B, H, L), x: (B, I, L); wz/wr/wq: (H, H+I) conv weights (k=1 squeezed)."""
    B, H, L = h.shape
    _, I, _ = x.shape
    rows = B * L

    # Lane-dense tiling: B*L on the 128-lane axis, padded to the tile width.
    tile_n = min(max_tile_n, _round_up(rows, 128))
    n_pad = _round_up(rows, tile_n)

    # NCL -> (channels, B*L) glue (one concat + one transpose).
    hx = jnp.concatenate([h, x], axis=1)                      # (B, H+I, L)
    hx2 = jnp.transpose(hx, (1, 0, 2)).reshape(H + I, rows)   # (H+I, B*L)
    if n_pad != rows:
        hx2 = jnp.pad(hx2, ((0, 0), (0, n_pad - rows)))
    hx2 = hx2.astype(jnp.bfloat16)                            # half the activation DMA

    # Weight prep (once per call): fuse z/r and the x-part of q into one matrix.
    wq_x_only = jnp.concatenate([jnp.zeros((H, H), wq.dtype), wq[:, H:]], axis=1)
    w_big = jnp.concatenate([wz, wr, wq_x_only], axis=0).astype(jnp.bfloat16)  # (3H, H+I)
    w_qh = wq[:, :H].astype(jnp.bfloat16)                                      # (H, H)

    out2 = pl.pallas_call(
        gru_kernel,
        out_shape=jax.ShapeDtypeStruct((H, n_pad), h.dtype),
        grid_spec=pltpu.PrefetchScalarGridSpec(
            num_scalar_prefetch=0,
            grid=(n_pad // tile_n,),
            in_specs=[
                pl.BlockSpec((H + I, tile_n), lambda i: (0, i)),   # activations
                pl.BlockSpec((3 * H, H + I), lambda i: (0, 0)),    # fused weight
                pl.BlockSpec((H, H), lambda i: (0, 0)),            # Wq_h
            ],
            out_specs=pl.BlockSpec((H, tile_n), lambda i: (0, i)),
        ),
        compiler_params=pltpu.CompilerParams(
            dimension_semantics=("parallel",),
            vmem_limit_bytes=32 * 1024 * 1024,
        ),
    )(hx2, w_big, w_qh)

    # (H, B*L) -> NCL glue (drop lane padding).
    return jnp.transpose(out2[:, :rows].reshape(H, B, L), (1, 0, 2))


def gru_reference(h, x, wz, wr, wq):
    """Pure-JAX f32 reference matching the PyTorch forward exactly."""
    hx = jnp.concatenate([h, x], axis=1)                      # (B, H+I, L)
    conv = lambda w, inp: jnp.einsum('oc,bcl->bol', w, inp)   # 1x1 Conv1d, no bias
    z = jax.nn.sigmoid(conv(wz, hx))
    r = jax.nn.sigmoid(conv(wr, hx))
    q = jnp.tanh(conv(wq, jnp.concatenate([r * h, x], axis=1)))
    return (1.0 - z) * h + z * q


if __name__ == "__main__":
    B, H, I, L = 2, 32, 32, 32   # batch, hidden_dim, input_dim, seq length

    key = jax.random.PRNGKey(0)
    k_h, k_x, k_wz, k_wr, k_wq = jax.random.split(key, 5)

    h = jax.random.normal(k_h, (B, H, L), dtype=jnp.float32)
    x = jax.random.normal(k_x, (B, I, L), dtype=jnp.float32)

    # Conv weights, shape (out_channels, in_channels) with kernel size 1 squeezed.
    scale = 1.0 / jnp.sqrt(jnp.float32(H + I))
    wz = jax.random.uniform(k_wz, (H, H + I), jnp.float32, -scale, scale)
    wr = jax.random.uniform(k_wr, (H, H + I), jnp.float32, -scale, scale)
    wq = jax.random.uniform(k_wq, (H, H + I), jnp.float32, -scale, scale)

    gru = jax.jit(gru_forward)
    out = jax.block_until_ready(gru(h, x, wz, wr, wq))

    ref = gru_reference(h, x, wz, wr, wq)
    assert out.shape == (B, H, L)
    # bf16 MXU operands (f32 accumulation) -> ~1e-2-level deviation vs f32 ref.
    assert jnp.allclose(out, ref, atol=5e-2, rtol=5e-2)

    print("KERNEL_OK")
</pallas_src>

<mosaic_0001>
module attributes {stable_mosaic.version = 11 : i64} {
  func.func @gru_kernel(%arg0: i32, %arg1: memref<64x128xbf16, #tpu.memory_space<vmem>>, %arg2: memref<96x64xbf16, #tpu.memory_space<vmem>>, %arg3: memref<32x32xbf16, #tpu.memory_space<vmem>>, %arg4: memref<32x128xf32, #tpu.memory_space<vmem>>) attributes {dimension_semantics = [#tpu.dimension_semantics<parallel>], iteration_bounds = array<i64: 1>, scalar_prefetch = 0 : i64, scratch_operands = 0 : i64, tpu.core_type = #tpu.core_type<tc>, window_params = [{transform_indices = @transform_0, window_bounds = array<i64: 64, 128>}, {pipeline_mode = #tpu.pipeline_mode<synchronous>, transform_indices = @transform_1, window_bounds = array<i64: 96, 64>}, {pipeline_mode = #tpu.pipeline_mode<synchronous>, transform_indices = @transform_2, window_bounds = array<i64: 32, 32>}, {transform_indices = @transform_3, window_bounds = array<i64: 32, 128>}]} {
    %c0 = arith.constant 0 : index
    %c0_0 = arith.constant 0 : index
    %0 = vector.load %arg1[%c0, %c0_0] : memref<64x128xbf16, #tpu.memory_space<vmem>>, vector<64x128xbf16>
    %1 = vector.extract_strided_slice %0 {offsets = [0, 0], sizes = [32, 128], strides = [1, 1]} : vector<64x128xbf16> to vector<32x128xbf16>
    %2 = arith.extf %1 : vector<32x128xbf16> to vector<32x128xf32>
    %c0_1 = arith.constant 0 : index
    %c0_2 = arith.constant 0 : index
    %3 = vector.load %arg2[%c0_1, %c0_2] : memref<96x64xbf16, #tpu.memory_space<vmem>>, vector<96x64xbf16>
    %cst = arith.constant dense<0.000000e+00> : vector<96x128xf32>
    %4 = tpu.matmul %3, %0, %cst {dimension_numbers = #tpu.dot_dimension_numbers<[1], [0], [0], [1], [0, 0, 1, 1], [], []>} : vector<96x64xbf16>, vector<64x128xbf16>, vector<96x128xf32> -> vector<96x128xf32>
    %5 = vector.extract_strided_slice %4 {offsets = [0, 0], sizes = [32, 128], strides = [1, 1]} : vector<96x128xf32> to vector<32x128xf32>
    %6 = arith.negf %5 : vector<32x128xf32>
    %7 = math.exp %6 : vector<32x128xf32>
    %cst_3 = arith.constant 1.000000e+00 : f32
    %8 = vector.broadcast %cst_3 : f32 to vector<32x128xf32>
    %9 = arith.addf %8, %7 : vector<32x128xf32>
    %10 = arith.divf %8, %9 : vector<32x128xf32>
    %11 = vector.extract_strided_slice %4 {offsets = [32, 0], sizes = [32, 128], strides = [1, 1]} : vector<96x128xf32> to vector<32x128xf32>
    %12 = arith.negf %11 : vector<32x128xf32>
    %13 = math.exp %12 : vector<32x128xf32>
    %cst_4 = arith.constant 1.000000e+00 : f32
    %14 = vector.broadcast %cst_4 : f32 to vector<32x128xf32>
    %15 = arith.addf %14, %13 : vector<32x128xf32>
    %16 = arith.divf %14, %15 : vector<32x128xf32>
    %17 = vector.extract_strided_slice %4 {offsets = [64, 0], sizes = [32, 128], strides = [1, 1]} : vector<96x128xf32> to vector<32x128xf32>
    %18 = arith.mulf %16, %2 : vector<32x128xf32>
    %19 = arith.truncf %18 : vector<32x128xf32> to vector<32x128xbf16>
    %c0_5 = arith.constant 0 : index
    %c0_6 = arith.constant 0 : index
    %20 = vector.load %arg3[%c0_5, %c0_6] : memref<32x32xbf16, #tpu.memory_space<vmem>>, vector<32x32xbf16>
    %cst_7 = arith.constant dense<0.000000e+00> : vector<32x128xf32>
    %21 = tpu.matmul %20, %19, %cst_7 {dimension_numbers = #tpu.dot_dimension_numbers<[1], [0], [0], [1], [0, 0, 1, 1], [], []>} : vector<32x32xbf16>, vector<32x128xbf16>, vector<32x128xf32> -> vector<32x128xf32>
    %22 = arith.addf %21, %17 : vector<32x128xf32>
    %23 = math.tanh %22 : vector<32x128xf32>
    %24 = arith.subf %23, %2 : vector<32x128xf32>
    %25 = arith.mulf %10, %24 : vector<32x128xf32>
    %26 = arith.addf %2, %25 : vector<32x128xf32>
    %c0_8 = arith.constant 0 : index
    %c0_9 = arith.constant 0 : index
    %27 = vector.load %arg4[%c0_8, %c0_9] : memref<32x128xf32, #tpu.memory_space<vmem>>, vector<32x128xf32>
    tpu.vector_store %arg4[%c0_8, %c0_9], %26 {strides = array<i32>} : memref<32x128xf32, #tpu.memory_space<vmem>>, vector<32x128xf32>,
    return
  }
  func.func @transform_0(%arg0: i32) -> (i32, i32) {
    %c0_i32 = arith.constant 0 : i32
    %c0_i32_0 = arith.constant 0 : i32
    return %c0_i32, %arg0 : i32, i32
  }
  func.func @transform_1(%arg0: i32) -> (i32, i32) {
    %c0_i32 = arith.constant 0 : i32
    %c0_i32_0 = arith.constant 0 : i32
    %c0_i32_1 = arith.constant 0 : i32
    return %c0_i32, %c0_i32_0 : i32, i32
  }
  func.func @transform_2(%arg0: i32) -> (i32, i32) {
    %c0_i32 = arith.constant 0 : i32
    %c0_i32_0 = arith.constant 0 : i32
    %c0_i32_1 = arith.constant 0 : i32
    return %c0_i32, %c0_i32_0 : i32, i32
  }
  func.func @transform_3(%arg0: i32) -> (i32, i32) {
    %c0_i32 = arith.constant 0 : i32
    %c0_i32_0 = arith.constant 0 : i32
    return %c0_i32, %arg0 : i32, i32
  }
}

</mosaic_0001>

<bundles_post_ra>
// kernel: gru_forward.1
= control target key start
LH: loop header
LB: loop body
LE: loop exit
PB: predicated region body
PF: predicated region fallthrough
CT: control target
= control target key end

     0   :  { %vm93_vm0 = vcmask 523264   ;;  %s675_s0 = inlined_call_operand.vmem [shape: bf16[64,128], index: 0, kind: input, shape index: {}]   ;;  %s676_s1 = inlined_call_operand.vmem [shape: bf16[96,64], index: 1, kind: input, shape index: {}]   ;;  %s677_s2 = inlined_call_operand.vmem [shape: bf16[32,32], index: 2, kind: input, shape index: {}]   ;;  %s678_s3 = inlined_call_operand.vmem [shape: f32[32,128], index: 3, kind: output, shape index: {}]  }
   0x1   :  { %v440_v0 = vld [vmem:[%s675_s0 + $0x18] sm:$0xff]  ;;  %v439_v1 = vld [vmem:[%s675_s0 + $0x10] sm:$0xff]  ;;  %v438_v2 = vld [vmem:[%s675_s0 + $0x8] sm:$0xff] }
   0x2   :  { %449 = vmatpush.bf16.msra.mxu2 %v440_v0  ;;  %116 = vmatpush.bf16.msra.mxu0 %v440_v0  ;;  %v437_v3 = vld [vmem:[%s675_s0] sm:$0xff]  ;;  %v443_v4 = vld [vmem:[%s676_s1 + $0x10] sm:$0xff]  ;;  %v444_v5 = vld [vmem:[%s676_s1 + $0x18] sm:$0xff] }
   0x3   :  { %450 = vmatpush.bf16.msra.mxu3 %v440_v0  ;;  %v441_v6 = vld [vmem:[%s676_s1] sm:$0xff]  ;;  %v442_v9 = vld [vmem:[%s676_s1 + $0x8] sm:$0xff] }
   0x4   :  { %v445_v8 = vld [vmem:[%s676_s1 + $0x20] sm:$0xff]  ;;  %v446_v25 = vld [vmem:[%s676_s1 + $0x28] sm:$0xff] }
   0x5   :  { %v17_v35 = vld [vmem:[%s675_s0 + $0x8] sm:$0xff]   ;;  %v15_v61 = vld [vmem:[%s675_s0] sm:$0xff]  }
   0x6   :  { %451 = vmatpush.bf16.msra.mxu2 %v439_v1  ;;  %117 = vmatpush.bf16.msra.mxu0 %v439_v1  ;;  %v571_v39 = vunpack.c.l.bf16 %v17_v35  ;;  %v574_v41 = vunpack.c.h.bf16 %v17_v35 }
   0x7   :  { %452 = vmatpush.bf16.msra.mxu3 %v439_v1 }
   0xa   :  { %453 = vmatpush.bf16.msra.mxu2 %v438_v2  ;;  %118 = vmatpush.bf16.msra.mxu0 %v438_v2 }
   0xb   :  { %454 = vmatpush.bf16.msra.mxu3 %v438_v2  ;;  %v612_v2 = vunpack.c.h.bf16 %v15_v61 }
   0xe   :  { %455 = vmatpush.bf16.msra.mxu2 %v437_v3  ;;  %119 = vmatpush.bf16.msra.mxu0 %v437_v3 }
   0xf   :  { %456 = vmatpush.bf16.msra.mxu3 %v437_v3 }
  0x11   :  { %415 = vmatmul.msk.bf16.vlgmr.msra.gmra.mxu2 %vm93_vm0, %v443_v4  ;;  %413 = vmatmul.msk.bf16.vlgmr.msra.gmra.mxu0 %vm93_vm0, %v441_v6 }
  0x12   :  { %417 = vmatmul.msk.bf16.vlgmr.msra.gmra.mxu3 %vm93_vm0, %v445_v8 }
  0x21   :  { %416 = vmatmul.msk.bf16.gmra.mxu2 %vm93_vm0, %v444_v5  ;;  %414 = vmatmul.msk.bf16.gmra.mxu0 %vm93_vm0, %v442_v9 }
  0x22   :  { %418 = vmatmul.msk.bf16.gmra.mxu3 %vm93_vm0, %v446_v25 }
  0x94   :  { %v131_v7 = vpop.f32.mrf.mxu2 }
  0x95   :  { %v423_v10 = vmul.f32 -1.442695, %v131_v7 }
  0x9c   :  { %v133_v11 = vpop.f32.mrf.mxu2 }
  0x9d   :  { %v424_v12 = vmul.f32 -1.442695, %v133_v11  ;;  %v619_v11 = vunpack.c.l.bf16 %v15_v61 }
  0x9f   :  { %457 = vpow2.f32 %v424_v12 }
  0xa0   :  { %459 = vpow2.f32 %v423_v10 }
  0xa4   :  { %v136_v13 = vpop.f32.mrf.mxu2 }
  0xa5   :  { %v458_v14 = vpop.eup %457  ;;  %v425_v15 = vmul.f32 -1.442695, %v136_v13 }
  0xa6   :  { %v460_v16 = vpop.eup %459  ;;  %v549_v17 = vadd.f32 1.0, %v458_v14 }
  0xa7   :  { %461 = vpow2.f32 %v425_v15  ;;  %v551_v18 = vadd.f32 1.0, %v460_v16 }
  0xa8   :  { %463 = vrcp.f32 %v549_v17  ;;  %vm263_vm3 = vweird.f32 %v549_v17  ;;  %v267_v51 = vand.u32 2147483647, %v549_v17  ;;  %v269_v52 = vand.u32 2147483648, %v549_v17 }
  0xa9   :  { %465 = vrcp.f32 %v551_v18  ;;  %vm248_vm8 = vweird.f32 %v551_v18  ;;  %v252_v57 = vand.u32 2147483647, %v551_v18  ;;  %v254_v58 = vand.u32 2147483648, %v551_v18 }
  0xaa   :  { %v270_v3 = vor.u32 1.1754944e-38, %v269_v52  ;;  %vm268_vm15 = vcmp.eq.f32.partialorder %v267_v51, 8.507059e+37 }
  0xab   :  { %v255_v7 = vor.u32 1.1754944e-38, %v254_v58  ;;  %vm253_vm0 = vcmp.eq.f32.partialorder %v252_v57, 8.507059e+37 }
  0xac   :  { %v138_v19 = vpop.f32.mrf.mxu2 }
  0xad   :  { %v462_v20 = vpop.eup %461  ;;  %v426_v21 = vmul.f32 -1.442695, %v138_v19  ;;  %v121_v19 = vpop.f32.mrf.mxu0 }
  0xae   :  { %v241_v22 = vadd.f32 1.0, %v462_v20  ;;  %v555_v23 = vpop.eup %463  ;;  %v419_v20 = vmul.f32 -1.442695, %v121_v19 }
  0xaf   :  { %467 = vpow2.f32 %v426_v21  ;;  %v557_v24 = vpop.eup %465  ;;  %v259_v27 = vmul.f32 %v555_v23, %v549_v17  ;;  %vm264_vm4 = vweird.f32 %v555_v23  ;;  %v447_v17 = vld [vmem:[%s677_s2] sm:$0xff] }
  0xb0   :  { %469 = vrcp.f32 %v241_v22  ;;  %v244_v29 = vmul.f32 %v557_v24, %v551_v18  ;;  %v284_v44 = vand.u32 2147483648, %v241_v22  ;;  %vm249_vm2 = vweird.f32 %v557_v24  ;;  %vm596_vm9 = vmor %vm263_vm3, %vm264_vm4  ;;  %v448_v18 = vld [vmem:[%s677_s2 + $0x8] sm:$0xff] }
  0xb1   :  { %v260_v33 = vsub.f32 1.0, %v259_v27  ;;  %vm278_vm5 = vweird.f32 %v241_v22  ;;  %v282_v45 = vand.u32 2147483647, %v241_v22  ;;  %vm605_vm12 = vmor %vm248_vm8, %vm249_vm2 }
  0xb2   :  { %v245_v34 = vsub.f32 1.0, %v244_v29  ;;  %v285_v56 = vor.u32 1.1754944e-38, %v284_v44 }
  0xb3   :  { %v261_v37 = vmul.f32 %v555_v23, %v260_v33  ;;  %vm283_vm10 = vcmp.eq.f32.partialorder %v282_v45, 8.507059e+37 }
  0xb4   :  { %v246_v40 = vmul.f32 %v557_v24, %v245_v34  ;;  %v141_v34 = vpop.f32.mrf.mxu3 }
  0xb5   :  { %v468_v26 = vpop.eup %467  ;;  %v262_v47 = vadd.f32 %v555_v23, %v261_v37  ;;  %v123_v21 = vpop.f32.mrf.mxu0 }
  0xb6   :  { %v470_v28 = vpop.eup %469  ;;  %v242_v30 = vadd.f32 1.0, %v468_v26  ;;  %v247_v50 = vadd.f32 %v557_v24, %v246_v40 }
  0xb7   :  { %v274_v31 = vmul.f32 %v470_v28, %v241_v22  ;;  %vm279_vm1 = vweird.f32 %v470_v28  ;;  %v266_v63 = vsel %vm596_vm9, %v555_v23, %v262_v47  ;;  %v420_v22 = vmul.f32 -1.442695, %v123_v21 }
  0xb8   :  { %471 = vrcp.f32 %v242_v30  ;;  %vm580_vm6 = vmor %vm278_vm5, %vm279_vm1  ;;  %v299_v49 = vand.u32 2147483648, %v242_v30  ;;  %v297_v55 = vand.u32 2147483647, %v242_v30  ;;  %vm293_vm11 = vweird.f32 %v242_v30 }
  0xb9   :  { %v275_v32 = vsub.f32 1.0, %v274_v31  ;;  %v251_v5 = vsel %vm605_vm12, %v557_v24, %v247_v50  ;;  %v271_v8 = vsel %vm268_vm15, %v270_v3, %v266_v63  ;;  %vm323_vm1 = vcmask 261120  }
  0xba   :  { %v300_v1 = vor.u32 1.1754944e-38, %v299_v49  ;;  %vm298_vm14 = vcmp.eq.f32.partialorder %v297_v55, 8.507059e+37  ;;  %v256_v12 = vsel %vm253_vm0, %v255_v7, %v251_v5  ;;  %v304_v14 = vmul.f32 %v271_v8, %v612_v2 }
  0xbb   :  { %v276_v36 = vmul.f32 %v470_v28, %v275_v32  ;;  %v303_v15 = vmul.f32 %v256_v12, %v619_v11  ;;  %473 = vpow2.f32 %v419_v20 }
  0xbc   :  { %475 = vpow2.f32 %v420_v22  ;;  %v143_v48 = vpop.f32.mrf.mxu3 }
  0xbd   :  { %v277_v42 = vadd.f32 %v470_v28, %v276_v36  ;;  %v307_v16 = vpack.c.bf16 %v304_v14, %v303_v15  ;;  %v126_v24 = vpop.f32.mrf.mxu0 }
  0xbe   :  { %v472_v38 = vpop.eup %471  ;;  %v421_v26 = vmul.f32 -1.442695, %v126_v24 }
  0xbf   :  { %v289_v43 = vmul.f32 %v472_v38, %v242_v30  ;;  %v281_v53 = vsel %vm580_vm6, %v470_v28, %v277_v42  ;;  %vm294_vm7 = vweird.f32 %v472_v38 }
  0xc0   :  { %v286_v0 = vsel %vm283_vm10, %v285_v56, %v281_v53  ;;  %vm295_vm13 = vmor %vm293_vm11, %vm294_vm7 }
  0xc1   :  { %v290_v46 = vsub.f32 1.0, %v289_v43  ;;  %v305_v9 = vmul.f32 %v286_v0, %v571_v39  ;;  %v474_v23 = vpop.eup %473 }
  0xc2   :  { %v163_v25 = vadd.f32 1.0, %v474_v23  ;;  %v476_v27 = vpop.eup %475 }
  0xc3   :  { %v291_v54 = vmul.f32 %v472_v38, %v290_v46  ;;  %v164_v28 = vadd.f32 1.0, %v476_v27 }
  0xc4   :  { %477 = vrcp.f32 %v163_v25  ;;  %vm172_vm2 = vweird.f32 %v163_v25  ;;  %v178_v45 = vand.u32 2147483648, %v163_v25  ;;  %v176_v50 = vand.u32 2147483647, %v163_v25 }
  0xc5   :  { %v292_v60 = vadd.f32 %v472_v38, %v291_v54  ;;  %479 = vpow2.f32 %v421_v26  ;;  %v128_v29 = vpop.f32.mrf.mxu0  ;;  %vm187_vm6 = vweird.f32 %v164_v28 }
  0xc6   :  { %v422_v31 = vmul.f32 -1.442695, %v128_v29  ;;  %481 = vrcp.f32 %v164_v28  ;;  %v179_v52 = vor.u32 1.1754944e-38, %v178_v45  ;;  %vm177_vm5 = vcmp.eq.f32.partialorder %v176_v50, 8.507059e+37 }
  0xc7   :  { %v296_v4 = vsel %vm295_vm13, %v472_v38, %v292_v60  ;;  %v193_v60 = vand.u32 2147483648, %v164_v28 }
  0xc8   :  { %v301_v6 = vsel %vm298_vm14, %v300_v1, %v296_v4  ;;  %483 = vpow2.f32 %v422_v31  ;;  %v191_v1 = vand.u32 2147483647, %v164_v28 }
  0xc9   :  { %v306_v10 = vmul.f32 %v301_v6, %v574_v41  ;;  %v146_v6 = vpop.f32.mrf.mxu3  ;;  %v194_v7 = vor.u32 1.1754944e-38, %v193_v60 }
  0xca   :  { %v478_v30 = vpop.eup %477  ;;  %vm192_vm9 = vcmp.eq.f32.partialorder %v191_v1, 8.507059e+37 }
  0xcb   :  { %v308_v13 = vpack.c.bf16 %v306_v10, %v305_v9  ;;  %v480_v32 = vpop.eup %479  ;;  %v168_v33 = vmul.f32 %v478_v30, %v163_v25  ;;  %vm173_vm3 = vweird.f32 %v478_v30 }
  0xcc   :  { %v629_v35 = vadd.f32 1.0, %v480_v32  ;;  %v482_v37 = vpop.eup %481  ;;  %vm174_vm4 = vmor %vm172_vm2, %vm173_vm3 }
  0xcd   :  { %336 = vmatpush.bf16.msra.mxu1 %v308_v13  ;;  %v169_v36 = vsub.f32 1.0, %v168_v33  ;;  %v183_v42 = vmul.f32 %v482_v37, %v164_v28  ;;  %vm188_vm7 = vweird.f32 %v482_v37 }
  0xce   :  { %485 = vrcp.f32 %v629_v35  ;;  %v484_v38 = vpop.eup %483  ;;  %vm637_vm8 = vmor %vm187_vm6, %vm188_vm7  ;;  %vm202_vm10 = vweird.f32 %v629_v35  ;;  %v208_v15 = vand.u32 2147483648, %v629_v35  ;;  %v206_v20 = vand.u32 2147483647, %v629_v35 }
  0xcf   :  { %v170_v40 = vmul.f32 %v478_v30, %v169_v36  ;;  %v632_v46 = vadd.f32 1.0, %v484_v38  ;;  %v184_v47 = vsub.f32 1.0, %v183_v42 }
  0xd0   :  { %v209_v23 = vor.u32 1.1754944e-38, %v208_v15  ;;  %vm207_vm13 = vcmp.eq.f32.partialorder %v206_v20, 8.507059e+37 }
  0xd1   :  { %337 = vmatpush.bf16.msra.mxu1 %v307_v16  ;;  %v171_v49 = vadd.f32 %v478_v30, %v170_v40  ;;  %v185_v53 = vmul.f32 %v482_v37, %v184_v47  ;;  %v148_v25 = vpop.f32.mrf.mxu3  ;;  %vm217_vm14 = vweird.f32 %v632_v46 }
  0xd3   :  { %v175_v55 = vsel %vm174_vm4, %v478_v30, %v171_v49  ;;  %v186_v0 = vadd.f32 %v482_v37, %v185_v53 }
  0xd4   :  { %435 = vmatmul.msk.bf16.vlgmr.msra.gmra.mxu1 %vm323_vm1, %v447_v17  ;;  %v486_v51 = vpop.eup %485  ;;  %v180_v61 = vsel %vm177_vm5, %v179_v52, %v175_v55 }
  0xd5   :  { %v198_v54 = vmul.f32 %v486_v51, %v629_v35  ;;  %v190_v10 = vsel %vm637_vm8, %v482_v37, %v186_v0  ;;  %vm203_vm11 = vweird.f32 %v486_v51 }
  0xd6   :  { %v195_v16 = vsel %vm192_vm9, %v194_v7, %v190_v10  ;;  %vm652_vm12 = vmor %vm202_vm10, %vm203_vm11 }
  0xd7   :  { %v199_v62 = vsub.f32 1.0, %v198_v54 }
  0xd9   :  { %v200_v8 = vmul.f32 %v486_v51, %v199_v62 }
  0xdb   :  { %v201_v19 = vadd.f32 %v486_v51, %v200_v8 }
  0xdd   :  { %v205_v26 = vsel %vm652_vm12, %v486_v51, %v201_v19 }
  0xde   :  { %v210_v31 = vsel %vm207_vm13, %v209_v23, %v205_v26 }
  0xe4   :  { %436 = vmatmul.msk.bf16.gmra.mxu1 %vm323_vm1, %v448_v18 }
 0x151   :  { %v339_v43 = vpop.f32.mrf.mxu1 }
 0x152   :  { %v340_v44 = vadd.f32 %v339_v43, %v141_v34  ;;  %v221_v34 = vand.u32 2147483647, %v632_v46 }
 0x154   :  { %487 = vtanh.f32 %v340_v44  ;;  %vm222_vm1 = vcmp.eq.f32.partialorder %v221_v34, 8.507059e+37 }
 0x155   :  { %489 = vrcp.f32 %v632_v46 }
 0x159   :  { %v341_v56 = vpop.f32.mrf.mxu1 }
 0x15a   :  { %v488_v57 = vpop.eup %487  ;;  %v342_v58 = vadd.f32 %v341_v56, %v143_v48 }
 0x15b   :  { %v353_v59 = vsub.f32 %v488_v57, %v619_v11  ;;  %v490_v3 = vpop.eup %489 }
 0x15c   :  { %491 = vtanh.f32 %v342_v58  ;;  %v213_v9 = vmul.f32 %v490_v3, %v632_v46  ;;  %vm218_vm15 = vweird.f32 %v490_v3 }
 0x15d   :  { %v357_v63 = vmul.f32 %v353_v59, %v180_v61  ;;  %vm219_vm0 = vmor %vm217_vm14, %vm218_vm15 }
 0x15e   :  { %v214_v17 = vsub.f32 1.0, %v213_v9 }
 0x15f   :  { %v361_v5 = vadd.f32 %v357_v63, %v619_v11 }
 0x160   :  { %v215_v24 = vmul.f32 %v490_v3, %v214_v17 }
 0x161   :  { %365 = vst [vmem:[%s678_s3] sm:$0xff] %v361_v5  ;;  %v344_v12 = vpop.f32.mrf.mxu1 }
 0x162   :  { %v492_v13 = vpop.eup %491  ;;  %v345_v14 = vadd.f32 %v344_v12, %v146_v6  ;;  %v216_v33 = vadd.f32 %v490_v3, %v215_v24 }
 0x163   :  { %v354_v11 = vsub.f32 %v492_v13, %v612_v2 }
 0x164   :  { %493 = vtanh.f32 %v345_v14  ;;  %v220_v37 = vsel %vm219_vm0, %v490_v3, %v216_v33 }
 0x165   :  { %v358_v18 = vmul.f32 %v354_v11, %v195_v16 }
 0x167   :  { %v362_v22 = vadd.f32 %v358_v18, %v612_v2  ;;  %v223_v2 = vand.u32 2147483648, %v632_v46 }
 0x169   :  { %366 = vst [vmem:[%s678_s3 + $0x8] sm:$0xff] %v362_v22  ;;  %v346_v27 = vpop.f32.mrf.mxu1  ;;  %v224_v36 = vor.u32 1.1754944e-38, %v223_v2 }
 0x16a   :  { %v494_v28 = vpop.eup %493  ;;  %v347_v29 = vadd.f32 %v346_v27, %v148_v25 }
 0x16b   :  { %v355_v30 = vsub.f32 %v494_v28, %v571_v39  ;;  %v225_v42 = vsel %vm222_vm1, %v224_v36, %v220_v37 }
 0x16c   :  { %495 = vtanh.f32 %v347_v29 }
 0x16d   :  { %v359_v32 = vmul.f32 %v355_v30, %v210_v31 }
 0x16f   :  { %v363_v35 = vadd.f32 %v359_v32, %v571_v39 }
 0x171   :  { %367 = vst [vmem:[%s678_s3 + $0x10] sm:$0xff] %v363_v35 }
 0x172   :  { %v496_v38 = vpop.eup %495 }
 0x173   :  { %v356_v40 = vsub.f32 %v496_v38, %v574_v41 }
 0x175   :  { %v360_v43 = vmul.f32 %v356_v40, %v225_v42 }
 0x177   :  { %v364_v44 = vadd.f32 %v360_v43, %v574_v41 }
 0x179   :  { %368 = vst [vmem:[%s678_s3 + $0x18] sm:$0xff] %v364_v44 }

</bundles_post_ra>
